<compile_context>
chip_gen: v6e
topology: v6e:2x2x1
jax: 0.10.0
libtpu: 0.0.40
codegen_flags: <defaults>
</compile_context>

<pallas_src>
import jax
import jax.numpy as jnp
from jax.experimental import pallas as pl
from jax.experimental.pallas import tpu as pltpu

_LANES = 128
_SUBLANE_PACK = 32                       # bool/int8 native tile is (32, 128)
_SMALL_BYPASS_BYTES = 4 * 1024 * 1024    # below this, fused jnp.isnan wins
_VMEM_STEP_BUDGET = 16 * 1024 * 1024     # per-step, double-buffered in + bool out
_MIN_GRID_STEPS = 4                      # keep both v7x TensorCores fed
_VMEM_LIMIT = 32 * 1024 * 1024           # within v7x scoped default / v5e physical


def _isnan_kernel(x_ref, o_ref):
    # NaN != NaN semantics handled by jnp.isnan (lowers to a VPU compare).
    o_ref[...] = jnp.isnan(x_ref[...])


def _choose_width(aligned_n: int) -> int:
    """Widest lane-dense row width that divides the 128-aligned size."""
    for w in (1024, 512, 256, _LANES):
        if aligned_n % w == 0:
            return w
    return _LANES


def _choose_tile_rows(num_rows: int, width: int, itemsize: int) -> int:
    """Sublane-dense row tile sized to the per-step VMEM budget, even step count."""
    if num_rows <= _SUBLANE_PACK:
        return num_rows  # single full-extent block (block == array dims is legal)
    per_row_bytes = width * (itemsize + 1) * 2   # input + bool output, 2x buffered
    cap = (_VMEM_STEP_BUDGET // per_row_bytes) // _SUBLANE_PACK * _SUBLANE_PACK
    cap = max(_SUBLANE_PACK, cap)
    # At least _MIN_GRID_STEPS steps, rounded up to an even count so the
    # "parallel" grid axis keeps both v7x TensorCores busy on every step.
    steps = max(_MIN_GRID_STEPS, -(-num_rows // cap))
    if steps % 2:
        steps += 1
    tr = -(-num_rows // steps)
    tr = -(-tr // _SUBLANE_PACK) * _SUBLANE_PACK  # round up to multiple of 32
    return max(_SUBLANE_PACK, min(tr, cap))


def pallas_isnan(x: jax.Array, *, force_pallas: bool = False) -> jax.Array:
    """Elementwise torch.isnan equivalent. Returns bool array, same shape as x."""
    orig_shape = x.shape
    n = x.size

    # torch.isnan is identically False for integer/bool tensors: no HBM read needed.
    if not jnp.issubdtype(x.dtype, jnp.inexact):
        return jnp.zeros(orig_shape, dtype=jnp.bool_)
    if n == 0:
        return jnp.zeros(orig_shape, dtype=jnp.bool_)
    # Mosaic has no f64/complex vector support; fall back to plain XLA there.
    if jnp.issubdtype(x.dtype, jnp.complexfloating) or jnp.dtype(x.dtype).itemsize >= 8:
        return jnp.isnan(x)

    itemsize = jnp.dtype(x.dtype).itemsize
    if not force_pallas and n * itemsize < _SMALL_BYPASS_BYTES:
        # Kernel launch + pipeline prologue dominate; let XLA fuse instead.
        return jnp.isnan(x)

    flat = x.reshape(-1)
    rem = n % _LANES
    aligned = n - rem
    if aligned == 0:
        return jnp.isnan(x)  # fewer than 128 elements: nothing kernel-worthy

    width = _choose_width(aligned)
    rows = aligned // width
    body = (flat[:aligned] if rem else flat).reshape(rows, width)

    tr = _choose_tile_rows(rows, width, itemsize)
    grid = (pl.cdiv(rows, tr),)

    out2d = pl.pallas_call(
        _isnan_kernel,
        out_shape=jax.ShapeDtypeStruct((rows, width), jnp.bool_),
        grid_spec=pl.GridSpec(
            grid=grid,
            in_specs=[pl.BlockSpec((tr, width), lambda i: (i, 0))],
            out_specs=pl.BlockSpec((tr, width), lambda i: (i, 0)),
        ),
        compiler_params=pltpu.CompilerParams(
            dimension_semantics=("parallel",),
            vmem_limit_bytes=_VMEM_LIMIT,
        ),
        cost_estimate=pl.CostEstimate(
            flops=0,
            transcendentals=0,
            bytes_accessed=aligned * itemsize + aligned,  # read x, write bool
        ),
    )(body)

    out_flat = out2d.reshape(-1)
    if rem:
        # <=127-element tail computed outside the kernel; avoids the old full-array
        # jnp.pad + output slice (two extra HBM passes) on unaligned sizes.
        tail = jnp.isnan(flat[aligned:])
        out_flat = jnp.concatenate([out_flat, tail])
    return out_flat.reshape(orig_shape)


if __name__ == "__main__":
    key = jax.random.PRNGKey(0)
    k1, k2, k3, k4, k5, k6 = jax.random.split(key, 6)

    # Primary test: small NCHW input matching the module's elementwise forward.
    x = jax.random.normal(k1, (2, 4, 16, 16), dtype=jnp.float32)
    x = jnp.where(jax.random.uniform(k2, x.shape) < 0.25, jnp.nan, x)
    out = jax.block_until_ready(pallas_isnan(x, force_pallas=True))
    assert out.dtype == jnp.bool_
    assert out.shape == x.shape
    assert bool(jnp.all(out == jnp.isnan(x)))

    # Odd (non-multiple-of-128) size exercises the aligned-prefix + tail path.
    y = jax.random.normal(k3, (7, 13, 5), dtype=jnp.float32)
    y = jnp.where(jax.random.uniform(k4, y.shape) < 0.25, jnp.nan, y)
    out_y = jax.block_until_ready(pallas_isnan(y, force_pallas=True))
    assert bool(jnp.all(out_y == jnp.isnan(y)))

    # rows (35) not a multiple of tile rows (32): locks in partial-block masking.
    z = jax.random.normal(k5, (1, 70, 128), dtype=jnp.float32)
    z = jnp.where(jax.random.uniform(k6, z.shape) < 0.25, jnp.nan, z)
    out_z = jax.block_until_ready(pallas_isnan(z, force_pallas=True))
    assert bool(jnp.all(out_z == jnp.isnan(z)))

    # bf16 path (sub-32-bit dtype) with a multi-step grid.
    w = jax.random.normal(k1, (1, 144, 256), dtype=jnp.bfloat16)
    w = jnp.where(jax.random.uniform(k2, w.shape) < 0.25, jnp.nan, w)
    out_w = jax.block_until_ready(pallas_isnan(w, force_pallas=True))
    assert bool(jnp.all(out_w == jnp.isnan(w)))

    # Integer dtype short-circuit (torch.isnan is all-False on ints).
    xi = jnp.arange(2 * 4 * 16, dtype=jnp.int32).reshape(2, 4, 16)
    out_i = jax.block_until_ready(pallas_isnan(xi))
    assert out_i.dtype == jnp.bool_ and not bool(jnp.any(out_i))

    # Default path (under the small-size bypass) still matches.
    out_bypass = jax.block_until_ready(pallas_isnan(x))
    assert bool(jnp.all(out_bypass == jnp.isnan(x)))

    print("KERNEL_OK")
</pallas_src>

<mosaic_0001>
module attributes {stable_mosaic.version = 11 : i64} {
  func.func @_isnan_kernel(%arg0: i32, %arg1: memref<2x1024xf32, #tpu.memory_space<vmem>>, %arg2: memref<2x1024xi32, #tpu.memory_space<vmem>>) attributes {dimension_semantics = [#tpu.dimension_semantics<parallel>], iteration_bounds = array<i64: 1>, scalar_prefetch = 0 : i64, scratch_operands = 0 : i64, tpu.core_type = #tpu.core_type<tc>, window_params = [{transform_indices = @transform_0, window_bounds = array<i64: 2, 1024>}, {transform_indices = @transform_1, window_bounds = array<i64: 2, 1024>}]} {
    %c0 = arith.constant 0 : index
    %c0_0 = arith.constant 0 : index
    %0 = vector.load %arg1[%c0, %c0_0] : memref<2x1024xf32, #tpu.memory_space<vmem>>, vector<2x1024xf32>
    %1 = arith.cmpf one, %0, %0 : vector<2x1024xf32>
    %c0_1 = arith.constant 0 : index
    %c0_2 = arith.constant 0 : index
    %2 = vector.load %arg2[%c0_1, %c0_2] : memref<2x1024xi32, #tpu.memory_space<vmem>>, vector<2x1024xi32>
    %3 = arith.extui %1 : vector<2x1024xi1> to vector<2x1024xi32>
    %cst = arith.constant dense<0> : vector<2x1024xi32>
    %4 = arith.cmpi ne, %2, %cst : vector<2x1024xi32>
    tpu.vector_store %arg2[%c0_1, %c0_2], %3 {strides = array<i32>} : memref<2x1024xi32, #tpu.memory_space<vmem>>, vector<2x1024xi32>,
    return
  }
  func.func @transform_0(%arg0: i32) -> (i32, i32) {
    %c0_i32 = arith.constant 0 : i32
    %c0_i32_0 = arith.constant 0 : i32
    return %arg0, %c0_i32 : i32, i32
  }
  func.func @transform_1(%arg0: i32) -> (i32, i32) {
    %c0_i32 = arith.constant 0 : i32
    %c0_i32_0 = arith.constant 0 : i32
    return %arg0, %c0_i32 : i32, i32
  }
}

</mosaic_0001>

<bundles_post_ra>
// kernel: tpu_custom_call.1
= control target key start
LH: loop header
LB: loop body
LE: loop exit
PB: predicated region body
PF: predicated region fallthrough
CT: control target
= control target key end

     0   :  { %6 = vsyncpa [#allocation3], 0  ;;  %s57_s6 = smov [#allocation2]   ;;  %s78_s0 = inlined_call_operand.hbm [shape: f32[2,1024], index: 0, kind: input, shape index: {}]   ;;  %s79_s1 = inlined_call_operand.vmem [shape: s32[2,1024], index: 1, kind: output, shape index: {}]  }
   0x1   :  { %s13_s7 = sshll.u32 %s57_s6, 4  ;;  %s14_s7 = int_to_ptr.vmem [resolvable:$true] %s13_s7 }
   0x2   :  { %s43_s8 = scalar_lea.vmem %s14_s7, 256  ;;  %p48_p1 = scmp.lt.s32.totalorder %s14_s7, %s14_s7 }
   0x3   :  { %p44_p0 = scmp.ne.s32.totalorder %s14_s7, %s43_s8  ;;  %p49_p2 = scmp.lt.s32.totalorder %s43_s8, %s43_s8 }
   0x5   :  { %p50_p3 = por %p49_p2, %p48_p1 }
   0x7   :  { %p51_p4 = pnand %p50_p3, %p44_p0 }
   0x9   :  { %54 = shalt.err (!%p51_p4)
}
   0xa   :  { %16 = dma.hbm_to_vmem [thread:$0]  %s78_s0, 256, %s14_s7, [#allocation3]  }
   0xb   :  { %55 = dma.done.wait [#allocation3], 256  }
   0xc   :  { %56 = vsyncadd [#allocation3], 4294967040  ;;  %v20_v0 = vld [vmem:[#allocation2] sm:$0xff]  ;;  %v21_v1 = vld [vmem:[#allocation2 + $0x8] sm:$0xff]  ;;  %v58_v2 = vmov 0  }
   0xd   :  { %vm22_vm0 = vcmp.ne.f32.partialorder %v20_v0, %v20_v0  ;;  %vm23_vm1 = vcmp.ne.f32.partialorder %v21_v1, %v21_v1 }
   0xe   :  { %v24_v3 = vsel %vm22_vm0, 1, %v58_v2  ;;  %v25_v4 = vsel %vm23_vm1, 1, %v58_v2 }
   0xf   :  { %26 = vst [vmem:[%s79_s1] sm:$0xff] %v24_v3  ;;  %27 = vst [vmem:[%s79_s1 + $0x8] sm:$0xff] %v25_v4 }
  0x10   :  { %32 = vsyncpa [#allocation3], 1 }

</bundles_post_ra>
